<compile_context>
chip_gen: v7x
topology: tpu7x:2x2x1
jax: 0.10.0
libtpu: 0.0.40
codegen_flags: <defaults>
</compile_context>

<pallas_src>
import jax
import jax.numpy as jnp
from jax import lax
from jax.experimental import pallas as pl
from jax.experimental.pallas import tpu as pltpu


# ----------------------------------------------------------------------------
# VMEM budget (per TPU generation) and tile selection
# ----------------------------------------------------------------------------
def _vmem_capacity_bytes():
    cap = 64 * 1024 * 1024          # conservative default: v7x per-TC VMEM
    try:
        info = pltpu.get_tpu_info()
        cap = int(getattr(info, "vmem_capacity_bytes", cap)) or cap
    except Exception:
        pass
    return cap


def _pick_tiles(N, M, R, W, D, itemsize, mode, G, budget):
    """Pick (bn, bm) so double-buffered blocks + scratch + group-matmul temps
    fit `budget` bytes.  bm aligned to 128 (lane-dense output), bn to 8."""
    bm_cands = [c for c in (1024, 768, 512, 384, 256, 128)
                if c <= M and M % c == 0] or [M]
    bn_all = [c for c in (256, 128, 64, 32, 16, 8) if c <= N and N % c == 0]
    bn_cands = [c for c in bn_all if c * R <= 2048] or bn_all or [N]

    def cost(bn, bm):
        caps = 2 * W * bm * D * itemsize            # held caption block (dbl-buffered)
        imgs = 2 * bn * R * D * itemsize            # streamed image block
        outb = 2 * bn * bm * 4                      # output block
        acc = (bn * R * bm * 4) if mode == "i2t" else (bn * bm * 4)
        wide = 2 * bn * R * G * bm * 4              # wide dot result + elementwise temps
        return caps + imgs + outb + acc + wide

    for bm_c in bm_cands:            # prefer the widest lane-dense caption block
        for bn_c in bn_cands:
            if cost(bn_c, bm_c) <= budget:
                return bn_c, bm_c, cost(bn_c, bm_c)
    bn, bm = bn_cands[-1], bm_cands[-1]             # smallest legal tiles
    # TODO(synk): when W*D is huge even the smallest legal caption block can
    # exceed the budget; tiling W via a third "arbitrary" grid axis (acc kept
    # in scratch) would fix that but is not implemented here.
    return bn, bm, cost(bn, bm)


def _maybe_split_for_megacore(N, M, bn, bm):
    """v7x has 2 TensorCores: split a (1,1) grid when tile legality allows."""
    if (N // bn) == 1 and (M // bm) == 1:
        if bn % 16 == 0:
            bn //= 2
        elif bm % 256 == 0:
            bm //= 2
    return bn, bm


# ----------------------------------------------------------------------------
# Kernel 1: cross-attention score matrix (i2t and t2i modes)
#
#   i2t: scores[i, j] = sum_r max_{w < eff_cap_len[j]} <im[i,r], cap[j,w]>
#                       / (obj_nums[i] + 1e-6)
#   t2i: scores[i, j] = sum_w max_{r < eff_obj[i]}     <im[i,r], cap[j,w]>
#                       / (cap_lens[j] + 1e-6)
#   (eff_* falls back to the full extent when the length is 0, as in torch.)
# ----------------------------------------------------------------------------
def _make_xattn_kernel(mode, W, R, G):
    contract = (((1,), (1,)), ((), ()))   # contract lhs/rhs on the shared minor D dim
    n_full = W // G
    rem = W % G

    def kernel(obj_ref, lens_ref, imgs_ref, caps_ref, out_ref, acc_ref):
        bn, _, D = imgs_ref.shape           # image block:   (bn, R, D)
        bm = caps_ref.shape[1]              # caption block: (W, bm, D), word-major
        imgs2 = imgs_ref[...].reshape(bn * R, D)             # (bn*R, D)  (hoisted)
        lens = lens_ref[...]                                 # (1, bm) int32
        obj = obj_ref[...]                                   # (bn, 1) int32

        def wide_dot(start, size):
            # One MXU push per word group: (bn*R, D) x (D, size*bm).
            caps_g = caps_ref[pl.ds(start, size), :, :]      # (size, bm, D)
            caps2 = caps_g.reshape(size * bm, D)
            return lax.dot_general(imgs2, caps2, contract,
                                   preferred_element_type=jnp.float32)

        if mode == "i2t":
            # word mask from cap_lens; divide by object count (loop-invariant).
            eff_words = jnp.where(lens == 0, jnp.int32(W), lens)       # (1, bm)
            inv_obj = 1.0 / (obj.astype(jnp.float32) + 1e-6)           # (bn, 1)

            def group_max(start, size):
                d = wide_dot(start, size)                              # (bn*R, size*bm)
                gmax = None
                for k in range(size):
                    # additive 0/-inf mask on the fresh scores (not on acc)
                    add_k = jnp.where((start + k) < eff_words, 0.0, -jnp.inf)
                    dk = d[:, k * bm:(k + 1) * bm] + add_k
                    gmax = dk if gmax is None else jnp.maximum(gmax, dk)
                return gmax

            acc_ref[...] = group_max(0, G)          # init folded into first group
            if n_full > 1:
                def body(g, carry):
                    start = pl.multiple_of(g * G, G)
                    acc_ref[...] = jnp.maximum(acc_ref[...], group_max(start, G))
                    return carry
                lax.fori_loop(1, n_full, body, 0, unroll=(n_full - 1) <= 8)
            if rem:
                acc_ref[...] = jnp.maximum(acc_ref[...], group_max(n_full * G, rem))

            mx = acc_ref[...].reshape(bn, R, bm)               # max over valid words
            out_ref[...] = jnp.sum(mx, axis=1) * inv_obj       # lane-dense (bn, bm)
        else:  # "t2i"
            # region mask from obj_nums (additive 0/-inf column, loop-invariant);
            # divide by caption length.
            eff_obj = jnp.where(obj == 0, jnp.int32(R), obj)            # (bn, 1)
            r_ids = lax.broadcasted_iota(jnp.int32, (bn, R, 1), 1)
            reg_add = jnp.where(r_ids < eff_obj.reshape(bn, 1, 1),
                                0.0, -jnp.inf).reshape(bn * R, 1)       # (bn*R, 1)
            inv_len = 1.0 / (lens.astype(jnp.float32) + 1e-6)           # (1, bm)

            def group_sum(start, size):
                d = wide_dot(start, size) + reg_add            # mask regions once
                gsum = None
                for k in range(size):
                    dk = d[:, k * bm:(k + 1) * bm].reshape(bn, R, bm)
                    mk = jnp.max(dk, axis=1)                   # max over valid regions
                    gsum = mk if gsum is None else gsum + mk
                return gsum

            acc_ref[...] = group_sum(0, G)          # init folded into first group
            if n_full > 1:
                def body(g, carry):
                    start = pl.multiple_of(g * G, G)
                    acc_ref[...] = acc_ref[...] + group_sum(start, G)
                    return carry
                lax.fori_loop(1, n_full, body, 0, unroll=(n_full - 1) <= 8)
            if rem:
                acc_ref[...] = acc_ref[...] + group_sum(n_full * G, rem)

            out_ref[...] = acc_ref[...] * inv_len              # lane-dense (bn, bm)

    return kernel


def _xattn_scores(images, obj_nums, captions, cap_lens, mode):
    images = jnp.asarray(images)
    captions = jnp.asarray(captions)
    N, R, D = images.shape
    M, W, Dc = captions.shape
    assert Dc == D, "images and captions must share the hidden dim"

    obj = jnp.asarray(obj_nums).astype(jnp.int32).reshape(N, 1)
    lens = jnp.asarray(cap_lens).astype(jnp.int32).reshape(1, M)
    # TODO(synk): produce captions word-major upstream to avoid this HBM transpose.
    caps_wmd = jnp.transpose(captions, (1, 0, 2))            # (W, M, D), word-major

    G = min(8, W)                                            # words per matmul group
    itemsize = jnp.dtype(images.dtype).itemsize
    cap = _vmem_capacity_bytes()
    budget = int(cap * 0.45)                                 # block working-set budget
    bn, bm, est = _pick_tiles(N, M, R, W, D, itemsize, mode, G, budget)
    bn, bm = _maybe_split_for_megacore(N, M, bn, bm)
    vmem_limit = min(cap - (4 << 20), max(int(cap * 0.7), est + (16 << 20)))

    grid = (M // bm, N // bn)     # captions held on the slow axis, images streamed
    acc_shape = (bn * R, bm) if mode == "i2t" else (bn, bm)

    return pl.pallas_call(
        _make_xattn_kernel(mode, W, R, G),
        out_shape=jax.ShapeDtypeStruct((N, M), jnp.float32),
        grid_spec=pltpu.PrefetchScalarGridSpec(
            num_scalar_prefetch=0,
            grid=grid,
            in_specs=[
                pl.BlockSpec((bn, 1), lambda j, i: (i, 0)),        # obj_nums
                pl.BlockSpec((1, bm), lambda j, i: (0, j)),        # cap_lens
                pl.BlockSpec((bn, R, D), lambda j, i: (i, 0, 0)),  # images (streamed)
                pl.BlockSpec((W, bm, D), lambda j, i: (0, j, 0)),  # captions (held)
            ],
            out_specs=pl.BlockSpec((bn, bm), lambda j, i: (i, j)),
            scratch_shapes=[pltpu.VMEM(acc_shape, jnp.float32)],
        ),
        compiler_params=pltpu.CompilerParams(
            dimension_semantics=("parallel", "parallel"),
            vmem_limit_bytes=vmem_limit,
        ),
    )(obj, lens, images, caps_wmd)


def xattn_score_i2t(images, obj_nums, captions, cap_lens):
    return _xattn_scores(images, obj_nums, captions, cap_lens, "i2t")


def xattn_score_t2i(images, obj_nums, captions, cap_lens):
    # Dedicated mode: writes the (n_image, n_caption) matrix directly.
    return _xattn_scores(images, obj_nums, captions, cap_lens, "t2i")


# ----------------------------------------------------------------------------
# Kernel 2: combine scores and compute the contrastive (hinge) loss
# ----------------------------------------------------------------------------
def _make_loss_kernel(margin, rate, max_violation):
    def loss_kernel(s1_ref, s2_ref, scores_ref, loss_ref):
        scores = s1_ref[...] + rate * s2_ref[...]
        scores_ref[...] = scores
        n, m = scores.shape
        row = lax.broadcasted_iota(jnp.int32, (n, m), 0)
        col = lax.broadcasted_iota(jnp.int32, (n, m), 1)
        eye = row == col
        diag_only = jnp.where(eye, scores, 0.0)
        d1 = jnp.sum(diag_only, axis=1, keepdims=True)   # (n, 1): diag[i] per row
        d2 = jnp.sum(diag_only, axis=0, keepdims=True)   # (1, m): diag[j] per col
        cost_s = jnp.where(eye, 0.0, jnp.maximum(margin + scores - d1, 0.0))
        cost_im = jnp.where(eye, 0.0, jnp.maximum(margin + scores - d2, 0.0))
        if max_violation:
            cost_s = jnp.max(cost_s, axis=1, keepdims=True)
            cost_im = jnp.max(cost_im, axis=0, keepdims=True)
        loss_ref[...] = (jnp.sum(cost_s, axis=(0, 1), keepdims=True)
                         + jnp.sum(cost_im, axis=(0, 1), keepdims=True))

    return loss_kernel


class ContrastiveLossMatrix:
    """JAX/Pallas port of SEMScene ContrastiveLoss_matrix (forward only)."""

    def __init__(self, predicate_score_rate=1.0, margin=0.0,
                 max_violation=False, cross_attn='i2t'):
        self.predicate_score_rate = float(predicate_score_rate)
        self.margin = float(margin)
        self.max_violation = bool(max_violation)
        self.cross_attn = cross_attn

    def set_max_violation(self, bool_set):
        self.max_violation = bool(bool_set is True)

    def __call__(self, im, im_l, s, s_l, pred, pred_l, s_pred, s_pred_l):
        if self.cross_attn == 't2i':
            scores1 = xattn_score_t2i(im, im_l, s, s_l)
            scores2 = xattn_score_t2i(pred, pred_l, s_pred, s_pred_l)
        elif self.cross_attn == 'i2t':
            scores1 = xattn_score_i2t(im, im_l, s, s_l)
            scores2 = xattn_score_i2t(pred, pred_l, s_pred, s_pred_l)
        else:
            raise ValueError('unknown first norm type')

        N, M = scores1.shape
        scores, loss = pl.pallas_call(
            _make_loss_kernel(self.margin, self.predicate_score_rate,
                              self.max_violation),
            out_shape=(jax.ShapeDtypeStruct((N, M), jnp.float32),
                       jax.ShapeDtypeStruct((1, 1), jnp.float32)),
            in_specs=[pl.BlockSpec(memory_space=pltpu.MemorySpace.VMEM),
                      pl.BlockSpec(memory_space=pltpu.MemorySpace.VMEM)],
            out_specs=(pl.BlockSpec(memory_space=pltpu.MemorySpace.VMEM),
                       pl.BlockSpec(memory_space=pltpu.MemorySpace.VMEM)),
        )(scores1, scores2)
        return loss[0, 0], scores


# ----------------------------------------------------------------------------
# Pure-JAX references (sanity checks only)
# ----------------------------------------------------------------------------
def _ref_xattn_i2t(images, obj_nums, captions, cap_lens):
    images = images.astype(jnp.float32)
    captions = captions.astype(jnp.float32)
    M, W, _ = captions.shape
    dot = jnp.einsum('nrd,mwd->nmrw', images, captions)
    eff = jnp.where(cap_lens == 0, W, cap_lens)
    mask = jnp.arange(W)[None, :] < eff[:, None]                 # (M, W)
    dot = jnp.where(mask[None, :, None, :], dot, -jnp.inf)
    sim = dot.max(axis=3).sum(axis=2)                            # (N, M)
    return sim / (obj_nums.astype(jnp.float32)[:, None] + 1e-6)


def _ref_xattn_t2i(images, obj_nums, captions, cap_lens):
    images = images.astype(jnp.float32)
    captions = captions.astype(jnp.float32)
    N, R, _ = images.shape
    dot = jnp.einsum('nrd,mwd->nmrw', images, captions)
    eff = jnp.where(obj_nums == 0, R, obj_nums)
    mask = jnp.arange(R)[None, :] < eff[:, None]                 # (N, R)
    dot = jnp.where(mask[:, None, :, None], dot, -jnp.inf)
    sim = dot.max(axis=2).sum(axis=2)                            # (N, M)
    return sim / (cap_lens.astype(jnp.float32)[None, :] + 1e-6)


def _ref_forward(im, im_l, s, s_l, pred, pred_l, s_pred, s_pred_l,
                 margin=0.0, rate=1.0, max_violation=False, cross_attn='i2t'):
    fn = _ref_xattn_i2t if cross_attn == 'i2t' else _ref_xattn_t2i
    sc = fn(im, im_l, s, s_l) + rate * fn(pred, pred_l, s_pred, s_pred_l)
    n = sc.shape[0]
    diag = jnp.diag(sc)[:, None]
    eye = jnp.eye(n, dtype=bool)
    cost_s = jnp.where(eye, 0.0, jnp.clip(margin + sc - diag, 0.0, None))
    cost_im = jnp.where(eye, 0.0, jnp.clip(margin + sc - diag.T, 0.0, None))
    if max_violation:
        cost_s = cost_s.max(axis=1)
        cost_im = cost_im.max(axis=0)
    return cost_s.sum() + cost_im.sum(), sc


if __name__ == "__main__":
    key = jax.random.PRNGKey(0)
    k_im, k_s, k_p, k_sp = jax.random.split(key, 4)

    B, R, W, D = 4, 8, 8, 32      # batch, max regions, max words, hidden
    # keep operands in bf16 (MXU-native); kernels accumulate in f32.
    im = jax.random.normal(k_im, (B, R, D), jnp.float32).astype(jnp.bfloat16)
    s = jax.random.normal(k_s, (B, W, D), jnp.float32).astype(jnp.bfloat16)
    pred = jax.random.normal(k_p, (B, R, D), jnp.float32).astype(jnp.bfloat16)
    s_pred = jax.random.normal(k_sp, (B, W, D), jnp.float32).astype(jnp.bfloat16)

    im_l = jnp.array([3, 5, 8, 2], dtype=jnp.int32)        # objects per image
    s_l = jnp.array([4, 8, 2, 6], dtype=jnp.int32)         # caption lengths
    pred_l = jnp.array([2, 6, 4, 1], dtype=jnp.int32)      # predicates per image
    s_pred_l = jnp.array([5, 3, 0, 4], dtype=jnp.int32)    # incl. a zero length

    configs = [('i2t', False), ('i2t', True), ('t2i', False)]
    for attn, maxv in configs:
        loss_fn = ContrastiveLossMatrix(predicate_score_rate=1.0, margin=0.1,
                                        max_violation=maxv, cross_attn=attn)
        loss, scores = loss_fn(im, im_l, s, s_l, pred, pred_l, s_pred, s_pred_l)
        jax.block_until_ready((loss, scores))

        ref_loss, ref_scores = _ref_forward(
            im, im_l, s, s_l, pred, pred_l, s_pred, s_pred_l,
            margin=0.1, rate=1.0, max_violation=maxv, cross_attn=attn)
        assert jnp.allclose(scores, ref_scores, rtol=2e-2, atol=2e-2), \
            f"scores mismatch vs reference ({attn}, max_violation={maxv})"
        assert jnp.allclose(loss, ref_loss, rtol=2e-2, atol=2e-2), \
            f"loss mismatch vs reference ({attn}, max_violation={maxv})"

    # TODO(synk): backward pass / gradient of the contrastive loss is not
    # implemented (forward-only port).
    print("KERNEL_OK")
</pallas_src>

<mosaic_0001>
module attributes {stable_mosaic.version = 11 : i64} {
  func.func @kernel(%arg0: i32, %arg1: i32, %arg2: memref<4x1xi32, #tpu.memory_space<vmem>>, %arg3: memref<1x4xi32, #tpu.memory_space<vmem>>, %arg4: memref<4x8x32xbf16, #tpu.memory_space<vmem>>, %arg5: memref<8x4x32xbf16, #tpu.memory_space<vmem>>, %arg6: memref<4x4xf32, #tpu.memory_space<vmem>>, %arg7: memref<32x4xf32, #tpu.memory_space<vmem>>) attributes {dimension_semantics = [#tpu.dimension_semantics<parallel>, #tpu.dimension_semantics<parallel>], iteration_bounds = array<i64: 1, 1>, scalar_prefetch = 0 : i64, scratch_operands = 1 : i64, tpu.core_type = #tpu.core_type<tc>, window_params = [{transform_indices = @transform_0, window_bounds = array<i64: 4, 1>}, {transform_indices = @transform_1, window_bounds = array<i64: 1, 4>}, {transform_indices = @transform_2, window_bounds = array<i64: 4, 8, 32>}, {transform_indices = @transform_3, window_bounds = array<i64: 8, 4, 32>}, {transform_indices = @transform_4, window_bounds = array<i64: 4, 4>}]} {
    %c0 = arith.constant 0 : index
    %c0_0 = arith.constant 0 : index
    %c0_1 = arith.constant 0 : index
    %0 = vector.load %arg4[%c0, %c0_0, %c0_1] : memref<4x8x32xbf16, #tpu.memory_space<vmem>>, vector<4x8x32xbf16>
    %1 = vector.shape_cast %0 : vector<4x8x32xbf16> to vector<32x32xbf16>
    %c0_2 = arith.constant 0 : index
    %c0_3 = arith.constant 0 : index
    %2 = vector.load %arg3[%c0_2, %c0_3] : memref<1x4xi32, #tpu.memory_space<vmem>>, vector<1x4xi32>
    %c0_4 = arith.constant 0 : index
    %c0_5 = arith.constant 0 : index
    %3 = vector.load %arg2[%c0_4, %c0_5] : memref<4x1xi32, #tpu.memory_space<vmem>>, vector<4x1xi32>
    %c0_i32 = arith.constant 0 : i32
    %4 = vector.broadcast %c0_i32 : i32 to vector<1x4xi32>
    %5 = arith.cmpi eq, %2, %4 : vector<1x4xi32>
    %c8_i32 = arith.constant 8 : i32
    %6 = vector.broadcast %c8_i32 : i32 to vector<1x4xi32>
    %7 = arith.select %5, %6, %2 : vector<1x4xi1>, vector<1x4xi32>
    %8 = arith.sitofp %3 : vector<4x1xi32> to vector<4x1xf32>
    %cst = arith.constant 9.99999997E-7 : f32
    %9 = vector.broadcast %cst : f32 to vector<4x1xf32>
    %10 = arith.addf %8, %9 : vector<4x1xf32>
    %cst_6 = arith.constant 1.000000e+00 : f32
    %11 = vector.broadcast %cst_6 : f32 to vector<4x1xf32>
    %12 = arith.divf %11, %10 : vector<4x1xf32>
    %c0_7 = arith.constant 0 : index
    %c0_8 = arith.constant 0 : index
    %c0_9 = arith.constant 0 : index
    %13 = vector.load %arg5[%c0_7, %c0_8, %c0_9] : memref<8x4x32xbf16, #tpu.memory_space<vmem>>, vector<8x4x32xbf16>
    %14 = vector.shape_cast %13 : vector<8x4x32xbf16> to vector<32x32xbf16>
    %cst_10 = arith.constant dense<0.000000e+00> : vector<32x32xf32>
    %15 = tpu.matmul %1, %14, %cst_10 {dimension_numbers = #tpu.dot_dimension_numbers<[1], [1], [0], [0], [0, 0, 1, 0], [], []>} : vector<32x32xbf16>, vector<32x32xbf16>, vector<32x32xf32> -> vector<32x32xf32>
    %c0_i32_11 = arith.constant 0 : i32
    %16 = vector.broadcast %c0_i32_11 : i32 to vector<1x4xi32>
    %17 = arith.cmpi sgt, %7, %16 : vector<1x4xi32>
    %cst_12 = arith.constant 0.000000e+00 : f32
    %cst_13 = arith.constant 0xFF800000 : f32
    %18 = vector.broadcast %cst_12 : f32 to vector<1x4xf32>
    %19 = vector.broadcast %cst_13 : f32 to vector<1x4xf32>
    %20 = arith.select %17, %18, %19 : vector<1x4xi1>, vector<1x4xf32>
    %21 = vector.extract_strided_slice %15 {offsets = [0, 0], sizes = [32, 4], strides = [1, 1]} : vector<32x32xf32> to vector<32x4xf32>
    %22 = vector.broadcast %20 : vector<1x4xf32> to vector<32x4xf32>
    %23 = arith.addf %21, %22 : vector<32x4xf32>
    %c1_i32 = arith.constant 1 : i32
    %24 = vector.broadcast %c1_i32 : i32 to vector<1x4xi32>
    %25 = arith.cmpi sgt, %7, %24 : vector<1x4xi32>
    %cst_14 = arith.constant 0.000000e+00 : f32
    %cst_15 = arith.constant 0xFF800000 : f32
    %26 = vector.broadcast %cst_14 : f32 to vector<1x4xf32>
    %27 = vector.broadcast %cst_15 : f32 to vector<1x4xf32>
    %28 = arith.select %25, %26, %27 : vector<1x4xi1>, vector<1x4xf32>
    %29 = vector.extract_strided_slice %15 {offsets = [0, 4], sizes = [32, 4], strides = [1, 1]} : vector<32x32xf32> to vector<32x4xf32>
    %30 = vector.broadcast %28 : vector<1x4xf32> to vector<32x4xf32>
    %31 = arith.addf %29, %30 : vector<32x4xf32>
    %32 = arith.maximumf %23, %31 : vector<32x4xf32>
    %c2_i32 = arith.constant 2 : i32
    %33 = vector.broadcast %c2_i32 : i32 to vector<1x4xi32>
    %34 = arith.cmpi sgt, %7, %33 : vector<1x4xi32>
    %cst_16 = arith.constant 0.000000e+00 : f32
    %cst_17 = arith.constant 0xFF800000 : f32
    %35 = vector.broadcast %cst_16 : f32 to vector<1x4xf32>
    %36 = vector.broadcast %cst_17 : f32 to vector<1x4xf32>
    %37 = arith.select %34, %35, %36 : vector<1x4xi1>, vector<1x4xf32>
    %38 = vector.extract_strided_slice %15 {offsets = [0, 8], sizes = [32, 4], strides = [1, 1]} : vector<32x32xf32> to vector<32x4xf32>
    %39 = vector.broadcast %37 : vector<1x4xf32> to vector<32x4xf32>
    %40 = arith.addf %38, %39 : vector<32x4xf32>
    %41 = arith.maximumf %32, %40 : vector<32x4xf32>
    %c3_i32 = arith.constant 3 : i32
    %42 = vector.broadcast %c3_i32 : i32 to vector<1x4xi32>
    %43 = arith.cmpi sgt, %7, %42 : vector<1x4xi32>
    %cst_18 = arith.constant 0.000000e+00 : f32
    %cst_19 = arith.constant 0xFF800000 : f32
    %44 = vector.broadcast %cst_18 : f32 to vector<1x4xf32>
    %45 = vector.broadcast %cst_19 : f32 to vector<1x4xf32>
    %46 = arith.select %43, %44, %45 : vector<1x4xi1>, vector<1x4xf32>
    %47 = vector.extract_strided_slice %15 {offsets = [0, 12], sizes = [32, 4], strides = [1, 1]} : vector<32x32xf32> to vector<32x4xf32>
    %48 = vector.broadcast %46 : vector<1x4xf32> to vector<32x4xf32>
    %49 = arith.addf %47, %48 : vector<32x4xf32>
    %50 = arith.maximumf %41, %49 : vector<32x4xf32>
    %c4_i32 = arith.constant 4 : i32
    %51 = vector.broadcast %c4_i32 : i32 to vector<1x4xi32>
    %52 = arith.cmpi sgt, %7, %51 : vector<1x4xi32>
    %cst_20 = arith.constant 0.000000e+00 : f32
    %cst_21 = arith.constant 0xFF800000 : f32
    %53 = vector.broadcast %cst_20 : f32 to vector<1x4xf32>
    %54 = vector.broadcast %cst_21 : f32 to vector<1x4xf32>
    %55 = arith.select %52, %53, %54 : vector<1x4xi1>, vector<1x4xf32>
    %56 = vector.extract_strided_slice %15 {offsets = [0, 16], sizes = [32, 4], strides = [1, 1]} : vector<32x32xf32> to vector<32x4xf32>
    %57 = vector.broadcast %55 : vector<1x4xf32> to vector<32x4xf32>
    %58 = arith.addf %56, %57 : vector<32x4xf32>
    %59 = arith.maximumf %50, %58 : vector<32x4xf32>
    %c5_i32 = arith.constant 5 : i32
    %60 = vector.broadcast %c5_i32 : i32 to vector<1x4xi32>
    %61 = arith.cmpi sgt, %7, %60 : vector<1x4xi32>
    %cst_22 = arith.constant 0.000000e+00 : f32
    %cst_23 = arith.constant 0xFF800000 : f32
    %62 = vector.broadcast %cst_22 : f32 to vector<1x4xf32>
    %63 = vector.broadcast %cst_23 : f32 to vector<1x4xf32>
    %64 = arith.select %61, %62, %63 : vector<1x4xi1>, vector<1x4xf32>
    %65 = vector.extract_strided_slice %15 {offsets = [0, 20], sizes = [32, 4], strides = [1, 1]} : vector<32x32xf32> to vector<32x4xf32>
    %66 = vector.broadcast %64 : vector<1x4xf32> to vector<32x4xf32>
    %67 = arith.addf %65, %66 : vector<32x4xf32>
    %68 = arith.maximumf %59, %67 : vector<32x4xf32>
    %c6_i32 = arith.constant 6 : i32
    %69 = vector.broadcast %c6_i32 : i32 to vector<1x4xi32>
    %70 = arith.cmpi sgt, %7, %69 : vector<1x4xi32>
    %cst_24 = arith.constant 0.000000e+00 : f32
    %cst_25 = arith.constant 0xFF800000 : f32
    %71 = vector.broadcast %cst_24 : f32 to vector<1x4xf32>
    %72 = vector.broadcast %cst_25 : f32 to vector<1x4xf32>
    %73 = arith.select %70, %71, %72 : vector<1x4xi1>, vector<1x4xf32>
    %74 = vector.extract_strided_slice %15 {offsets = [0, 24], sizes = [32, 4], strides = [1, 1]} : vector<32x32xf32> to vector<32x4xf32>
    %75 = vector.broadcast %73 : vector<1x4xf32> to vector<32x4xf32>
    %76 = arith.addf %74, %75 : vector<32x4xf32>
    %77 = arith.maximumf %68, %76 : vector<32x4xf32>
    %c7_i32 = arith.constant 7 : i32
    %78 = vector.broadcast %c7_i32 : i32 to vector<1x4xi32>
    %79 = arith.cmpi sgt, %7, %78 : vector<1x4xi32>
    %cst_26 = arith.constant 0.000000e+00 : f32
    %cst_27 = arith.constant 0xFF800000 : f32
    %80 = vector.broadcast %cst_26 : f32 to vector<1x4xf32>
    %81 = vector.broadcast %cst_27 : f32 to vector<1x4xf32>
    %82 = arith.select %79, %80, %81 : vector<1x4xi1>, vector<1x4xf32>
    %83 = vector.extract_strided_slice %15 {offsets = [0, 28], sizes = [32, 4], strides = [1, 1]} : vector<32x32xf32> to vector<32x4xf32>
    %84 = vector.broadcast %82 : vector<1x4xf32> to vector<32x4xf32>
    %85 = arith.addf %83, %84 : vector<32x4xf32>
    %86 = arith.maximumf %77, %85 : vector<32x4xf32>
    %c0_28 = arith.constant 0 : index
    %c0_29 = arith.constant 0 : index
    %87 = vector.load %arg7[%c0_28, %c0_29] : memref<32x4xf32, #tpu.memory_space<vmem>>, vector<32x4xf32>
    tpu.vector_store %arg7[%c0_28, %c0_29], %86 {strides = array<i32>} : memref<32x4xf32, #tpu.memory_space<vmem>>, vector<32x4xf32>,
    %c0_30 = arith.constant 0 : index
    %c0_31 = arith.constant 0 : index
    %88 = vector.load %arg7[%c0_30, %c0_31] : memref<32x4xf32, #tpu.memory_space<vmem>>, vector<32x4xf32>
    %89 = vector.shape_cast %88 : vector<32x4xf32> to vector<4x8x4xf32>
    %cst_32 = arith.constant dense<0.000000e+00> : vector<4x4xf32>
    %90 = vector.multi_reduction <add>, %89, %cst_32 [1] : vector<4x8x4xf32> to vector<4x4xf32>
    %91 = vector.broadcast %12 : vector<4x1xf32> to vector<4x4xf32>
    %92 = arith.mulf %90, %91 : vector<4x4xf32>
    %c0_33 = arith.constant 0 : index
    %c0_34 = arith.constant 0 : index
    %93 = vector.load %arg6[%c0_33, %c0_34] : memref<4x4xf32, #tpu.memory_space<vmem>>, vector<4x4xf32>
    tpu.vector_store %arg6[%c0_33, %c0_34], %92 {strides = array<i32>} : memref<4x4xf32, #tpu.memory_space<vmem>>, vector<4x4xf32>,
    return
  }
  func.func @transform_0(%arg0: i32, %arg1: i32) -> (i32, i32) {
    %c0_i32 = arith.constant 0 : i32
    %c0_i32_0 = arith.constant 0 : i32
    return %arg1, %c0_i32 : i32, i32
  }
  func.func @transform_1(%arg0: i32, %arg1: i32) -> (i32, i32) {
    %c0_i32 = arith.constant 0 : i32
    %c0_i32_0 = arith.constant 0 : i32
    return %c0_i32, %arg0 : i32, i32
  }
  func.func @transform_2(%arg0: i32, %arg1: i32) -> (i32, i32, i32) {
    %c0_i32 = arith.constant 0 : i32
    %c0_i32_0 = arith.constant 0 : i32
    %c0_i32_1 = arith.constant 0 : i32
    return %arg1, %c0_i32, %c0_i32_0 : i32, i32, i32
  }
  func.func @transform_3(%arg0: i32, %arg1: i32) -> (i32, i32, i32) {
    %c0_i32 = arith.constant 0 : i32
    %c0_i32_0 = arith.constant 0 : i32
    %c0_i32_1 = arith.constant 0 : i32
    return %c0_i32, %arg0, %c0_i32_0 : i32, i32, i32
  }
  func.func @transform_4(%arg0: i32, %arg1: i32) -> (i32, i32) {
    %c0_i32 = arith.constant 0 : i32
    return %arg1, %arg0 : i32, i32
  }
}

</mosaic_0001>

<bundles_post_ra>
// kernel: tpu_custom_call.1
= control target key start
LH: loop header
LB: loop body
LE: loop exit
PB: predicated region body
PF: predicated region fallthrough
CT: control target
= control target key end

     0   :  { %9 = vsyncpa [#allocation4], 0  ;;  %s858_s0 = inlined_call_operand.vmem [shape: s32[4,1], index: 0, kind: input, shape index: {}]   ;;  %s859_s1 = inlined_call_operand.hbm [shape: s32[1,4], index: 1, kind: input, shape index: {}]   ;;  %s860_s2 = inlined_call_operand.hbm [shape: bf16[4,8,32], index: 2, kind: input, shape index: {}]   ;;  %s861_s3 = inlined_call_operand.vmem [shape: bf16[8,4,32], index: 3, kind: input, shape index: {}]   ;;  %s862_s4 = inlined_call_operand.hbm [shape: f32[4,4], index: 4, kind: output, shape index: {}]  }
   0x1   :  { %10 = vsyncpa [#allocation7], 0 }
   0x2   :  { %11 = vsyncpa [#allocation5], 0  ;;  %s630_s15 = smov [#allocation3]   ;;  %s631_s17 = smov [#allocation6]  }
   0x3   :  { %s20_s16 = sshll.u32 %s630_s15, 4  ;;  %s29_s18 = sshll.u32 %s631_s17, 4  ;;  %s21_s16 = int_to_ptr.vmem [resolvable:$true] %s20_s16  ;;  %s676_s18 = int_to_ptr.vmem [resolvable:$true] %s29_s18 }
   0x4   :  { %s558_s21 = scalar_lea.hbm %s859_s1, 16 }
   0x5   :  { %p559_p0 = scmp.ne.s32.totalorder %s859_s1, %s558_s21  ;;  %p562_p1 = scmp.lt.u32.totalorder %s558_s21, %s859_s1 }
   0x7   :  { %p564_p2 = pnand %p562_p1, %p559_p0 }
   0x9   :  { %567 = shalt.err (!%p564_p2)
}
   0xa   :  { %s568_s26 = scalar_lea.vmem %s21_s16, 16  ;;  %s572_s27 = scalar_lea.vmem %s21_s16, 32 }
   0xb   :  { %p569_p3 = scmp.ne.s32.totalorder %s21_s16, %s568_s26  ;;  %p573_p4 = scmp.lt.s32.totalorder %s21_s16, %s21_s16 }
   0xc   :  { %p574_p5 = scmp.lt.s32.totalorder %s572_s27, %s568_s26 }
   0xe   :  { %p575_p6 = por %p574_p5, %p573_p4 }
  0x10   :  { %p576_p7 = pnand %p575_p6, %p569_p3 }
  0x12   :  { %579 = shalt.err (!%p576_p7)
}
  0x13   :  { %23 = dma.hbm_to_vmem [thread:$0]  %s859_s1, 16, %s21_s16, [#allocation4]  }
  0x14   :  { %s580_s6 = scalar_lea.hbm %s860_s2, 256 }
  0x15   :  { %p581_p8 = scmp.ne.s32.totalorder %s860_s2, %s580_s6  ;;  %p584_p9 = scmp.lt.u32.totalorder %s580_s6, %s860_s2 }
  0x17   :  { %p586_p10 = pnand %p584_p9, %p581_p8 }
  0x19   :  { %589 = shalt.err (!%p586_p10)
}
  0x1a   :  { %s590_s11 = scalar_lea.vmem %s676_s18, 256  ;;  %p595_p12 = scmp.lt.s32.totalorder %s676_s18, %s676_s18 }
  0x1b   :  { %p591_p11 = scmp.ne.s32.totalorder %s676_s18, %s590_s11  ;;  %p596_p13 = scmp.lt.s32.totalorder %s590_s11, %s590_s11 }
  0x1d   :  { %p597_p0 = por %p596_p13, %p595_p12 }
  0x1f   :  { %p598_p1 = pnand %p597_p0, %p591_p11 }
  0x21   :  { %601 = shalt.err (!%p598_p1)
}
  0x22   :  { %s632_s1 = smov 64   ;;  %s633_s12 = smov 4  }
  0x23   :  { %35 = dma.hbm_to_vmem [thread:$0]  %s860_s2, 256, %s676_s18, [#allocation7], %s632_s1, %s632_s1, %s633_s12  }
  0x24   :  { %624 = dma.done.wait [#allocation4], 16  }
  0x25   :  { %625 = vsyncadd [#allocation4], 4294967280 }
  0x26   :  { %626 = dma.done.wait [#allocation7], 256  }
  0x27   :  { %627 = vsyncadd [#allocation7], 4294967040  ;;  %v88_v0 = vlaneseq  ;;  %v634_v1 = vmov 1983009808   ;;  %v57_v6 = vld [vmem:[%s861_s3] sm:$0x3] }
  0x28   :  { %v86_v2 = vunpack.c.l.s4 %v634_v1  ;;  %v58_v7 = vld [vmem:[%s861_s3 + $0x2] sm:$0x3]  ;;  %v59_v8 = vld [vmem:[%s861_s3 + $0x4] sm:$0x3]  ;;  %v60_v9 = vld [vmem:[%s861_s3 + $0x6] sm:$0x3] }
  0x29   :  { %v89_v3 = vshrl.u32 %v88_v0, 7  ;;  %v83_v10 = vcombine.low %v57_v6, %v58_v7  ;;  %v61_v11 = vld [vmem:[%s861_s3 + $0x8] sm:$0x3]  ;;  %v62_v12 = vld [vmem:[%s861_s3 + $0xa] sm:$0x3]  ;;  %v84_v13 = vcombine.low %v59_v8, %v60_v9  ;;  %v554_v19 = vld [vmem:[#allocation6] sm:$0xff]  }
  0x2a   :  { %v87_v4 = vunpack.c.0.s8 %v86_v2  ;;  %v63_v14 = vld [vmem:[%s861_s3 + $0xc] sm:$0x3]  ;;  %v64_v15 = vld [vmem:[%s861_s3 + $0xe] sm:$0x3]  ;;  %v100_v16 = vcombine.low %v61_v11, %v62_v12  ;;  %vm117_vm0 = vcmask 261120   ;;  %v635_v29 = vmov -inf  }
  0x2b   :  { %v101_v18 = vcombine.low %v63_v14, %v64_v15  ;;  %v49_v22 = vld [vmem:[#allocation3] sm:$0x1]  ;;  %v732_v23 = vsub.s32 0, %v89_v3  ;;  %525 = vmatprep.mubr.msk.bf16.mxu0 %vm117_vm0, %v554_v19  ;;  %s636_s3 = smov 12   ;;  %s637_s30 = smov 8   ;;  %v555_v45 = vld [vmem:[#allocation6 + $0x8] sm:$0xff]  }
  0x2c   :  { %v90_v5 = vsub.s32 %v87_v4, %v89_v3  ;;  %vm51_vm1 = vcmp.eq.s32.totalorder %v49_v22, 0  ;;  %s638_s5 = smov 16   ;;  %s639_s6 = smov 20   ;;  %v642_v46 = vmov 0   ;;  %v50_v12 = vld [vmem:[%s858_s0] sm:$0xf] }
  0x2d   :  { %v735_v26 = vsel %vm51_vm1, 8, %v49_v22  ;;  %s640_s7 = smov 24   ;;  %s641_s8 = smov 28   ;;  %552 = vset.pattern.permute.xlu1 %v642_v46  ;;  %553 = vset.pattern.permute.xlu0 %v642_v46  ;;  %v53_v15 = vcvt.s32.f32 %v50_v12  ;;  %vm429_vm10 = vcmask 31744   ;;  %vm486_vm11 = vcmask 1041409  }
  0x2e   :  { %v91_v17 = vrot.slane %v83_v10, %v90_v5  ;;  %v98_v20 = vrot.slane %v84_v13, %v90_v5  ;;  %v108_v21 = vrot.slane %v100_v16, %v90_v5  ;;  %v115_v24 = vrot.slane %v101_v18, %v90_v5  ;;  %s643_s9 = smov 124   ;;  %s644_s10 = smov 120  }
  0x2f   :  { %vm191_vm2 = vcmp.gt.s32.totalorder %v735_v26, 1  ;;  %vm259_vm3 = vcmp.gt.s32.totalorder %v735_v26, 3  ;;  %vm225_vm4 = vcmp.gt.s32.totalorder %v735_v26, 2  ;;  %vm293_vm5 = vcmp.gt.s32.totalorder %v735_v26, 4  ;;  %s645_s11 = smov 116   ;;  %s646_s1 = smov 112  }
  0x30   :  { %v99_v25 = vcombine.low %v91_v17, %v98_v20  ;;  %v116_v27 = vcombine.low %v108_v21, %v115_v24  ;;  %v192_v30 = vsel %vm191_vm2, 0.0, %v635_v29  ;;  %v260_v31 = vsel %vm259_vm3, 0.0, %v635_v29  ;;  %s648_s13 = smov 104   ;;  %s649_s14 = smov 100  }
  0x31   :  { %v226_v32 = vsel %vm225_vm4, 0.0, %v635_v29  ;;  %v197_v33 = vrot.slane %v192_v30, %v732_v23  ;;  %v265_v34 = vrot.slane %v260_v31, %v732_v23  ;;  %vm327_vm6 = vcmp.gt.s32.totalorder %v735_v26, 5  ;;  %s650_s0 = smov [#allocation8]  }
  0x32   :  { %529 = vmatprep.subr.msk.bf16.mxu0 %vm117_vm0, %v99_v25  ;;  %v125_v28 = vsel %vm117_vm0, %v99_v25, 0  ;;  %vm361_vm7 = vcmp.gt.s32.totalorder %v735_v26, 6  ;;  %v231_v35 = vrot.slane %v226_v32, %v732_v23  ;;  %v294_v36 = vsel %vm293_vm5, 0.0, %v635_v29  ;;  %s503_s17 = sshll.u32 %s650_s0, 4  ;;  %s504_s17 = int_to_ptr.vmem [resolvable:$true] %s503_s17 }
  0x33   :  { %522 = vmatpush3.bf16.xpose.msra.mxu0 %v125_v28  ;;  %198 = vrot.lane.b32.xlu0 %v197_v33, %s633_s12  ;;  %v299_v37 = vrot.slane %v294_v36, %v732_v23  ;;  %v328_v38 = vsel %vm327_vm6, 0.0, %v635_v29  ;;  %v362_v39 = vsel %vm361_vm7, 0.0, %v635_v29  ;;  %vm395_vm8 = vcmp.gt.s32.totalorder %v735_v26, 7  ;;  %s647_s12 = smov 108   ;;  %s602_s19 = scalar_lea.vmem %s504_s17, 64 }
  0x34   :  { %530 = vmatprep.subr.msk.bf16.mxu0 %vm117_vm0, %v116_v27  ;;  %266 = vrot.lane.b32.xlu1 %v265_v34, %s636_s3  ;;  %v128_v40 = vsel %vm117_vm0, %v116_v27, 0  ;;  %v333_v41 = vrot.slane %v328_v38, %v732_v23  ;;  %v367_v42 = vrot.slane %v362_v39, %v732_v23  ;;  %v396_v43 = vsel %vm395_vm8, 0.0, %v635_v29  ;;  %p603_p2 = scmp.ne.s32.totalorder %s504_s17, %s602_s19  ;;  %p607_p3 = scmp.lt.s32.totalorder %s504_s17, %s504_s17 }
  0x35   :  { %v401_v44 = vrot.slane %v396_v43, %v732_v23  ;;  %v54_v18 = vadd.f32 1e-06, %v53_v15  ;;  %vm179_vm9 = vcmp.gt.s32.totalorder %v735_v26, 0  ;;  %vm489_vm12 = vcmask 1042434   ;;  %p608_p4 = scmp.lt.s32.totalorder %s602_s19, %s602_s19 }
  0x36   :  { %v180_v31 = vsel %vm179_vm9, 0.0, %v635_v29  ;;  %vm492_vm13 = vcmask 1043459   ;;  %vm495_vm14 = vcmask 27648  }
  0x37   :  { %232 = vrot.lane.b32.xlu0 %v231_v35, %s637_s30  ;;  %556 = vrcp.f32 %v54_v18  ;;  %v185_v34 = vrot.slane %v180_v31, %v732_v23  ;;  %p609_p5 = por %p608_p4, %p607_p3 }
  0x38   :  { %300 = vrot.lane.b32.xlu1 %v299_v37, %s638_s5 }
  0x39   :  { %p610_p6 = pnand %p609_p5, %p603_p2 }
  0x3b   :  { %524 = vmatpush3.bf16.xpose.msra.mxu0 %v128_v40  ;;  %334 = vrot.lane.b32.xlu0 %v333_v41, %s639_s6 }
  0x3c   :  { %368 = vrot.lane.b32.xlu1 %v367_v42, %s640_s7 }
  0x3f   :  { %402 = vrot.lane.b32.xlu0 %v401_v44, %s641_s8 }
  0x41   :  { %v557_v27 = vpop.eup %556 }
  0x42   :  { %526 = vmatmul.mubr.msk.bf16.vlgmr.msra.gmra.mrb[0].mxu0 %vm117_vm0, %v555_v45 }
  0xa5   :  { %v199_v47 = vpop.permute.xlu0 %198 }
  0xa6   :  { %v267_v56 = vpop.permute.xlu1 %266 }
  0xa9   :  { %v233_v54 = vpop.permute.xlu0 %232 }
  0xaa   :  { %v301_v60 = vpop.permute.xlu1 %300 }
  0xad   :  { %v335_v63 = vpop.permute.xlu0 %334 }
  0xae   :  { %v369_v1 = vpop.permute.xlu1 %368 }
  0xb1   :  { %v403_v4 = vpop.permute.xlu0 %402 }
 0x115   :  { %v764_v48 = vpop.f32.mrb[0].mxu0 }
 0x116   :  { %v766_v49 = vpop.f32.mrb[1].mxu0  ;;  %v203_v50 = vadd.f32 %v764_v48, %v199_v47  ;;  %v237_v55 = vadd.f32 %v764_v48, %v233_v54  ;;  %v271_v58 = vadd.f32 %v764_v48, %v267_v56  ;;  %v305_v61 = vadd.f32 %v764_v48, %v301_v60 }
 0x117   :  { %v769_v51 = vpop.f32.mrb[2].mxu0  ;;  %v201_v52 = vadd.f32 %v199_v47, %v766_v49  ;;  %v235_v57 = vadd.f32 %v233_v54, %v766_v49  ;;  %v269_v59 = vadd.f32 %v267_v56, %v766_v49  ;;  %v303_v62 = vadd.f32 %v301_v60, %v766_v49 }
 0x118   :  { %213 = vrot.lane.b32.xlu0 %v203_v50, %s643_s9  ;;  %v773_v53 = vpop.f32.mrb[3].mxu0  ;;  %v339_v0 = vadd.f32 %v764_v48, %v335_v63  ;;  %v337_v2 = vadd.f32 %v335_v63, %v766_v49  ;;  %v373_v3 = vadd.f32 %v764_v48, %v369_v1  ;;  %v371_v5 = vadd.f32 %v369_v1, %v766_v49 }
 0x119   :  { %209 = vrot.lane.b32.xlu1 %v201_v52, %s643_s9  ;;  %v407_v6 = vadd.f32 %v764_v48, %v403_v4  ;;  %v202_v7 = vadd.f32 %v199_v47, %v773_v53  ;;  %v204_v8 = vadd.f32 %v769_v51, %v199_v47  ;;  %v236_v9 = vadd.f32 %v233_v54, %v773_v53 }
 0x11a   :  { %v238_v10 = vadd.f32 %v769_v51, %v233_v54  ;;  %v270_v11 = vadd.f32 %v267_v56, %v773_v53  ;;  %v272_v13 = vadd.f32 %v769_v51, %v267_v56  ;;  %v304_v14 = vadd.f32 %v301_v60, %v773_v53 }
 0x11b   :  { %v306_v16 = vadd.f32 %v769_v51, %v301_v60  ;;  %v338_v17 = vadd.f32 %v335_v63, %v773_v53  ;;  %v340_v19 = vadd.f32 %v769_v51, %v335_v63  ;;  %v372_v20 = vadd.f32 %v369_v1, %v773_v53 }
 0x11c   :  { %247 = vrot.lane.b32.xlu0 %v237_v55, %s644_s10  ;;  %v374_v21 = vadd.f32 %v769_v51, %v369_v1  ;;  %v406_v22 = vadd.f32 %v403_v4, %v773_v53  ;;  %v408_v24 = vadd.f32 %v769_v51, %v403_v4  ;;  %v405_v25 = vadd.f32 %v403_v4, %v766_v49 }
 0x11d   :  { %243 = vrot.lane.b32.xlu1 %v235_v57, %s644_s10  ;;  %v189_v37 = vadd.f32 %v764_v48, %v185_v34  ;;  %v188_v57 = vadd.f32 %v185_v34, %v773_v53 }
 0x120   :  { %281 = vrot.lane.b32.xlu0 %v271_v58, %s645_s11 }
 0x121   :  { %277 = vrot.lane.b32.xlu1 %v269_v59, %s645_s11 }
 0x124   :  { %315 = vrot.lane.b32.xlu0 %v305_v61, %s646_s1  ;;  %v190_v61 = vadd.f32 %v769_v51, %v185_v34 }
 0x125   :  { %311 = vrot.lane.b32.xlu1 %v303_v62, %s646_s1  ;;  %v187_v62 = vadd.f32 %v185_v34, %v766_v49 }
 0x128   :  { %349 = vrot.lane.b32.xlu0 %v339_v0, %s647_s12 }
 0x129   :  { %345 = vrot.lane.b32.xlu1 %v337_v2, %s647_s12 }
 0x12c   :  { %383 = vrot.lane.b32.xlu0 %v373_v3, %s648_s13 }
 0x12d   :  { %379 = vrot.lane.b32.xlu1 %v371_v5, %s648_s13 }
 0x130   :  { %417 = vrot.lane.b32.xlu0 %v407_v6, %s649_s14 }
 0x131   :  { %211 = vrot.lane.b32.xlu1 %v202_v7, %s643_s9 }
 0x134   :  { %215 = vrot.lane.b32.xlu0 %v204_v8, %s643_s9 }
 0x135   :  { %245 = vrot.lane.b32.xlu1 %v236_v9, %s644_s10 }
 0x138   :  { %249 = vrot.lane.b32.xlu0 %v238_v10, %s644_s10 }
 0x139   :  { %279 = vrot.lane.b32.xlu1 %v270_v11, %s645_s11 }
 0x13c   :  { %283 = vrot.lane.b32.xlu0 %v272_v13, %s645_s11 }
 0x13d   :  { %313 = vrot.lane.b32.xlu1 %v304_v14, %s646_s1 }
 0x140   :  { %317 = vrot.lane.b32.xlu0 %v306_v16, %s646_s1 }
 0x141   :  { %347 = vrot.lane.b32.xlu1 %v338_v17, %s647_s12 }
 0x144   :  { %351 = vrot.lane.b32.xlu0 %v340_v19, %s647_s12 }
 0x145   :  { %381 = vrot.lane.b32.xlu1 %v372_v20, %s648_s13 }
 0x148   :  { %385 = vrot.lane.b32.xlu0 %v374_v21, %s648_s13 }
 0x149   :  { %415 = vrot.lane.b32.xlu1 %v406_v22, %s649_s14 }
 0x14c   :  { %419 = vrot.lane.b32.xlu0 %v408_v24, %s649_s14 }
 0x14d   :  { %413 = vrot.lane.b32.xlu1 %v405_v25, %s649_s14 }
 0x151   :  { %468 = vperm.xlu1 %552, %v557_v27  }
 0x18a   :  { %v214_v28 = vpop.permute.xlu0 %213 }
 0x18b   :  { %v210_v30 = vpop.permute.xlu1 %209  ;;  %v223_v39 = vmax.f32 %v189_v37, %v214_v28 }
 0x18c   :  { %v221_v3 = vmax.f32 %v187_v62, %v210_v30 }
 0x18e   :  { %v248_v32 = vpop.permute.xlu0 %247 }
 0x18f   :  { %v244_v33 = vpop.permute.xlu1 %243  ;;  %v257_v41 = vmax.f32 %v223_v39, %v248_v32 }
 0x190   :  { %v255_v6 = vmax.f32 %v221_v3, %v244_v33 }
 0x192   :  { %v282_v35 = vpop.permute.xlu0 %281 }
 0x193   :  { %v278_v36 = vpop.permute.xlu1 %277  ;;  %v291_v43 = vmax.f32 %v257_v41, %v282_v35 }
 0x194   :  { %v289_v53 = vmax.f32 %v255_v6, %v278_v36 }
 0x196   :  { %v316_v38 = vpop.permute.xlu0 %315 }
 0x197   :  { %v312_v40 = vpop.permute.xlu1 %311  ;;  %v325_v45 = vmax.f32 %v291_v43, %v316_v38 }
 0x198   :  { %v323_v14 = vmax.f32 %v289_v53, %v312_v40 }
 0x19a   :  { %v350_v42 = vpop.permute.xlu0 %349 }
 0x19b   :  { %v346_v44 = vpop.permute.xlu1 %345  ;;  %v359_v46 = vmax.f32 %v325_v45, %v350_v42 }
 0x19c   :  { %v357_v18 = vmax.f32 %v323_v14, %v346_v44 }
 0x19e   :  { %v384_v26 = vpop.permute.xlu0 %383 }
 0x19f   :  { %v380_v47 = vpop.permute.xlu1 %379  ;;  %v393_v29 = vmax.f32 %v359_v46, %v384_v26 }
 0x1a0   :  { %v391_v21 = vmax.f32 %v357_v18, %v380_v47 }
 0x1a2   :  { %v418_v50 = vpop.permute.xlu0 %417 }
 0x1a3   :  { %v427_v52 = vmax.f32 %v393_v29, %v418_v50  ;;  %v212_v23 = vpop.permute.xlu1 %211 }
 0x1a4   :  { %v222_v60 = vmax.f32 %v188_v57, %v212_v23 }
 0x1a5   :  { %432 = vst.msk [vmem:[#allocation2 + $0x10] sm:$0xff] %vm429_vm10, %v427_v52 }
 0x1a6   :  { %v216_v54 = vpop.permute.xlu0 %215 }
 0x1a7   :  { %v246_v48 = vpop.permute.xlu1 %245  ;;  %v224_v1 = vmax.f32 %v190_v61, %v216_v54 }
 0x1a8   :  { %v256_v63 = vmax.f32 %v222_v60, %v246_v48 }
 0x1aa   :  { %v250_v55 = vpop.permute.xlu0 %249 }
 0x1ab   :  { %v280_v56 = vpop.permute.xlu1 %279  ;;  %v258_v5 = vmax.f32 %v224_v1, %v250_v55 }
 0x1ac   :  { %v290_v4 = vmax.f32 %v256_v63, %v280_v56  ;;  %v436_v12 = vld [vmem:[#allocation2 + $0x10] sm:$0xff] }
 0x1ad   :  { %v452_v17 = vsel %vm429_vm10, %v436_v12, 0.0 }
 0x1ae   :  { %v284_v58 = vpop.permute.xlu0 %283  ;;  %v453_v24 = vrot.slane %v452_v17, 4 }
 0x1af   :  { %v314_v59 = vpop.permute.xlu1 %313  ;;  %v292_v9 = vmax.f32 %v258_v5, %v284_v58 }
 0x1b0   :  { %v324_v7 = vmax.f32 %v290_v4, %v314_v59  ;;  %v454_v30 = vadd.f32 %v453_v24, %v452_v17 }
 0x1b2   :  { %v318_v0 = vpop.permute.xlu0 %317  ;;  %v455_v32 = vrot.slane %v454_v30, 2 }
 0x1b3   :  { %v348_v2 = vpop.permute.xlu1 %347  ;;  %v326_v13 = vmax.f32 %v292_v9, %v318_v0 }
 0x1b4   :  { %v358_v11 = vmax.f32 %v324_v7, %v348_v2  ;;  %v456_v40 = vadd.f32 %v455_v32, %v454_v30 }
 0x1b6   :  { %v352_v8 = vpop.permute.xlu0 %351  ;;  %v457_v46 = vrot.slane %v456_v40, 1 }
 0x1b7   :  { %v382_v10 = vpop.permute.xlu1 %381  ;;  %v360_v49 = vmax.f32 %v326_v13, %v352_v8 }
 0x1b8   :  { %v392_v51 = vmax.f32 %v358_v11, %v382_v10  ;;  %v458_v57 = vadd.f32 %v457_v46, %v456_v40 }
 0x1ba   :  { %v386_v15 = vpop.permute.xlu0 %385 }
 0x1bb   :  { %v416_v16 = vpop.permute.xlu1 %415  ;;  %v394_v20 = vmax.f32 %v360_v49, %v386_v15 }
 0x1bc   :  { %v426_v19 = vmax.f32 %v392_v51, %v416_v16 }
 0x1be   :  { %431 = vst.msk [vmem:[#allocation2 + $0x8] sm:$0xff] %vm429_vm10, %v426_v19  ;;  %v420_v22 = vpop.permute.xlu0 %419 }
 0x1bf   :  { %v428_v25 = vmax.f32 %v394_v20, %v420_v22  ;;  %v414_v27 = vpop.permute.xlu1 %413 }
 0x1c0   :  { %v425_v28 = vmax.f32 %v391_v21, %v414_v27 }
 0x1c1   :  { %433 = vst.msk [vmem:[#allocation2 + $0x18] sm:$0xff] %vm429_vm10, %v428_v25 }
 0x1c2   :  { %430 = vst.msk [vmem:[#allocation2] sm:$0xff] %vm429_vm10, %v425_v28 }
 0x1c5   :  { %v435_v31 = vld [vmem:[#allocation2 + $0x8] sm:$0xff] }
 0x1c6   :  { %v445_v33 = vsel %vm429_vm10, %v435_v31, 0.0 }
 0x1c7   :  { %v446_v34 = vrot.slane %v445_v33, 4 }
 0x1c8   :  { %v437_v35 = vld [vmem:[#allocation2 + $0x18] sm:$0xff] }
 0x1c9   :  { %v434_v36 = vld [vmem:[#allocation2] sm:$0xff]  ;;  %v459_v37 = vsel %vm429_vm10, %v437_v35, 0.0  ;;  %v447_v38 = vadd.f32 %v446_v34, %v445_v33 }
 0x1ca   :  { %v438_v39 = vsel %vm429_vm10, %v434_v36, 0.0  ;;  %v460_v41 = vrot.slane %v459_v37, 4 }
 0x1cb   :  { %v439_v42 = vrot.slane %v438_v39, 4  ;;  %v448_v43 = vrot.slane %v447_v38, 2 }
 0x1cc   :  { %v461_v44 = vadd.f32 %v460_v41, %v459_v37 }
 0x1cd   :  { %v440_v45 = vadd.f32 %v439_v42, %v438_v39  ;;  %v449_v26 = vadd.f32 %v448_v43, %v447_v38 }
 0x1ce   :  { %v462_v47 = vrot.slane %v461_v44, 2 }
 0x1cf   :  { %v441_v29 = vrot.slane %v440_v45, 2  ;;  %v450_v50 = vrot.slane %v449_v26, 1 }
 0x1d0   :  { %v463_v52 = vadd.f32 %v462_v47, %v461_v44  ;;  %v469_v23 = vpop.permute.xlu1 %468 }
 0x1d1   :  { %v442_v54 = vadd.f32 %v441_v29, %v440_v45  ;;  %v451_v48 = vadd.f32 %v450_v50, %v449_v26  ;;  %v470_v55 = vrot.slane %v469_v23, 1  ;;  %v471_v56 = vrot.slane %v469_v23, 2 }
 0x1d2   :  { %v464_v58 = vrot.slane %v463_v52, 1  ;;  %v472_v59 = vrot.slane %v469_v23, 3 }
 0x1d3   :  { %v443_v60 = vrot.slane %v442_v54, 1  ;;  %v478_v61 = vmul.f32 %v470_v55, %v451_v48  ;;  %v479_v63 = vmul.f32 %v471_v56, %v458_v57 }
 0x1d4   :  { %v465_v62 = vadd.f32 %v464_v58, %v463_v52 }
 0x1d5   :  { %v444_v0 = vadd.f32 %v443_v60, %v442_v54  ;;  %v485_v3 = vrot.slane %v478_v61, 7  ;;  %v488_v4 = vrot.slane %v479_v63, 6 }
 0x1d6   :  { %v480_v1 = vmul.f32 %v472_v59, %v465_v62 }
 0x1d7   :  { %v477_v2 = vmul.f32 %v469_v23, %v444_v0 }
 0x1d8   :  { %v491_v5 = vrot.slane %v480_v1, 5 }
 0x1d9   :  { %v487_v6 = vsel %vm486_vm11, %v485_v3, %v477_v2 }
 0x1da   :  { %v490_v7 = vsel %vm489_vm12, %v488_v4, %v487_v6 }
 0x1db   :  { %v493_v8 = vsel %vm492_vm13, %v491_v5, %v490_v7 }
 0x1dc   :  { %496 = vst.msk [vmem:[#allocation8] sm:$0xf] %vm495_vm14, %v493_v8 }
 0x1dd   :  { %613 = shalt.err (!%p610_p6)
}
 0x1de   :  { %s614_s18 = scalar_lea.hbm %s862_s4, 64 }
 0x1df   :  { %p615_p7 = scmp.ne.s32.totalorder %s862_s4, %s614_s18  ;;  %p618_p8 = scmp.lt.u32.totalorder %s614_s18, %s862_s4 }
 0x1e1   :  { %p620_p9 = pnand %p618_p8, %p615_p7 }
 0x1e3   :  { %623 = shalt.err (!%p620_p9)
}
 0x1e4   :  { %506 = dma.vmem_to_hbm [thread:$0]  %s504_s17, 64, %s862_s4, [#allocation5]  }
 0x1e5   :  { %628 = dma.done.wait [#allocation5], 64  }
 0x1e6   :  { %629 = vsyncadd [#allocation5], 4294967232 }
 0x1e7   :  { %510 = vsyncpa [#allocation4], 1 }
 0x1e8   :  { %511 = vsyncpa [#allocation7], 1 }
 0x1e9   :  { %512 = vsyncpa [#allocation5], 1 }

</bundles_post_ra>
